<compile_context>
chip_gen: v6e
topology: v6e:2x2x1
jax: 0.10.0
libtpu: 0.0.40
codegen_flags: <defaults>
</compile_context>

<pallas_src>
import functools
import math

import jax
import jax.numpy as jnp
from jax import lax
from jax.experimental import pallas as pl
from jax.experimental.pallas import tpu as pltpu


def _layer_norm(x, gamma, beta, eps):
    """Custom PyTorch LayerNorm: gamma*(x-mean)/(unbiased_std + eps) + beta."""
    d = x.shape[-1]
    mean = jnp.mean(x, axis=-1, keepdims=True)
    centered = x - mean
    var = jnp.sum(centered * centered, axis=-1, keepdims=True) * (1.0 / (d - 1))
    return gamma * centered / (jnp.sqrt(var) + eps) + beta


def _encoder_layer_kernel(
    x_ref, mask_ref,
    wqkv_ref, bqkv_ref, wo_ref, bo_ref,
    g1_ref, be1_ref,
    w1_ref, b1_ref, w2_ref, b2_ref,
    g2_ref, be2_ref,
    o_ref,
    *, num_heads, eps,
):
    """Processes one batch element (1, S, D) per grid step, fully in VMEM."""
    x = x_ref[0].astype(jnp.float32)              # (S, D)
    mask_is_zero = (mask_ref[0] == 0)             # (S, S); True => masked out
    S, D = x.shape
    d_k = D // num_heads
    scale = 1.0 / math.sqrt(d_k)
    neg_inf = jnp.float32(-1e9)

    # ---------- sublayer 0: pre-norm -> multi-head self-attention -> residual
    xn = _layer_norm(x, g1_ref[...].astype(jnp.float32),
                     be1_ref[...].astype(jnp.float32), eps)

    # Fused Q/K/V projection: one (S,D) @ (D,3D) MXU matmul + one bias add.
    qkv = jnp.dot(xn, wqkv_ref[...].astype(jnp.float32),
                  preferred_element_type=jnp.float32) \
        + bqkv_ref[...].astype(jnp.float32)        # (S, 3D)

    wo = wo_ref[...].astype(jnp.float32)

    # concat_h(out_h) @ Wo  ==  sum_h out_h @ Wo[h*d_k:(h+1)*d_k, :]
    attn_proj = jnp.zeros((S, D), jnp.float32)
    for h in range(num_heads):                     # static unroll over heads
        lo = h * d_k
        q_h = qkv[:, lo:lo + d_k]
        k_h = qkv[:, D + lo:D + lo + d_k]
        v_h = qkv[:, 2 * D + lo:2 * D + lo + d_k]
        # Q @ K^T without an explicit transpose (contract last dims).
        scores = lax.dot_general(
            q_h, k_h, (((1,), (1,)), ((), ())),
            preferred_element_type=jnp.float32) * scale          # (S, S)
        scores = jnp.where(mask_is_zero, neg_inf, scores)
        scores = scores - jnp.max(scores, axis=-1, keepdims=True)
        p = jnp.exp(scores)
        p = p / jnp.sum(p, axis=-1, keepdims=True)               # softmax
        # TODO(synk): attention dropout skipped (eval mode identity).
        out_h = jnp.dot(p, v_h, preferred_element_type=jnp.float32)   # (S, d_k)
        attn_proj = attn_proj + jnp.dot(out_h, wo[lo:lo + d_k, :],
                                        preferred_element_type=jnp.float32)

    y = x + attn_proj + bo_ref[...].astype(jnp.float32)   # residual 1

    # ---------- sublayer 1: pre-norm -> position-wise feed-forward -> residual
    yn = _layer_norm(y, g2_ref[...].astype(jnp.float32),
                     be2_ref[...].astype(jnp.float32), eps)
    h1 = jnp.dot(yn, w1_ref[...].astype(jnp.float32),
                 preferred_element_type=jnp.float32) + b1_ref[...].astype(jnp.float32)
    h1 = jnp.maximum(h1, 0.0)                      # relu; FFN dropout = identity (eval)
    ff = jnp.dot(h1, w2_ref[...].astype(jnp.float32),
                 preferred_element_type=jnp.float32) + b2_ref[...].astype(jnp.float32)
    z = y + ff                                     # residual 2

    o_ref[0] = z.astype(o_ref.dtype)


def encoder_layer_forward(x, mask, params, *, num_heads, eps=1e-6):
    """x: (B, S, D); mask: (B, S, S) with 0 => masked.

    Weight matrices are stored in (in, out) orientation (transposed relative
    to torch.nn.Linear.weight), so the kernel computes plain x @ W + b.
    """
    B, S, D = x.shape
    p = params

    # Fuse Q/K/V projection weights/biases outside the kernel (traced once).
    wqkv = jnp.concatenate([p["wq"], p["wk"], p["wv"]], axis=1)   # (D, 3D)
    bqkv = jnp.concatenate([p["bq"], p["bk"], p["bv"]], axis=1)   # (1, 3D)

    def batch_spec(shape):
        rest = (0,) * (len(shape) - 1)
        return pl.BlockSpec((1,) + tuple(shape[1:]), lambda b, _r=rest: (b,) + _r)

    def const_spec(arr):
        zeros = (0,) * arr.ndim
        return pl.BlockSpec(tuple(arr.shape), lambda b, _z=zeros: _z)

    operands = (
        x, mask,
        wqkv, bqkv, p["wo"], p["bo"],
        p["g1"], p["be1"],
        p["w1"], p["b1"], p["w2"], p["b2"],
        p["g2"], p["be2"],
    )
    in_specs = [batch_spec(x.shape), batch_spec(mask.shape)] + [
        const_spec(a) for a in operands[2:]
    ]

    kernel = functools.partial(_encoder_layer_kernel, num_heads=num_heads, eps=eps)
    return pl.pallas_call(
        kernel,
        out_shape=jax.ShapeDtypeStruct((B, S, D), x.dtype),
        grid_spec=pltpu.PrefetchScalarGridSpec(
            num_scalar_prefetch=0,
            grid=(B,),
            in_specs=in_specs,
            out_specs=pl.BlockSpec((1, S, D), lambda b: (b, 0, 0)),
        ),
        compiler_params=pltpu.CompilerParams(
            # Independent batch axis -> sharded across the 2 TensorCores on v7x.
            dimension_semantics=("parallel",),
        ),
    )(*operands)


def _reference_encoder_layer(x, mask, params, num_heads, eps=1e-6):
    """Pure-JAX mirror of the PyTorch EncoderLayer (eval mode)."""
    def ln(t, g, b):
        d = t.shape[-1]
        mean = t.mean(-1, keepdims=True)
        c = t - mean
        std = jnp.sqrt((c * c).sum(-1, keepdims=True) / (d - 1))
        return g * c / (std + eps) + b

    B, S, D = x.shape
    d_k = D // num_heads
    p = params

    xn = ln(x, p["g1"], p["be1"])
    q = xn @ p["wq"] + p["bq"]
    k = xn @ p["wk"] + p["bk"]
    v = xn @ p["wv"] + p["bv"]

    def split(t):
        return t.reshape(B, S, num_heads, d_k).transpose(0, 2, 1, 3)

    qh, kh, vh = split(q), split(k), split(v)
    scores = jnp.einsum("bhqd,bhkd->bhqk", qh, kh) / math.sqrt(d_k)
    scores = jnp.where(mask[:, None, :, :] == 0, -1e9, scores)
    attn_w = jax.nn.softmax(scores, axis=-1)
    ctx = jnp.einsum("bhqk,bhkd->bhqd", attn_w, vh)
    ctx = ctx.transpose(0, 2, 1, 3).reshape(B, S, D)
    y = x + (ctx @ p["wo"] + p["bo"])

    yn = ln(y, p["g2"], p["be2"])
    ff = jnp.maximum(yn @ p["w1"] + p["b1"], 0.0) @ p["w2"] + p["b2"]
    return y + ff


if __name__ == "__main__":
    # Small shapes consistent with the module: batch=2, seq=8, d_model=32,
    # heads=4 (d_k=8), d_hidden=64.
    B, S, D, H, D_HID = 2, 8, 32, 4, 64
    ks = jax.random.split(jax.random.PRNGKey(0), 18)

    def w(k, shape, s=0.2):
        return jax.random.normal(k, shape, jnp.float32) * s

    params = dict(
        wq=w(ks[0], (D, D)), bq=w(ks[1], (1, D)),
        wk=w(ks[2], (D, D)), bk=w(ks[3], (1, D)),
        wv=w(ks[4], (D, D)), bv=w(ks[5], (1, D)),
        wo=w(ks[6], (D, D)), bo=w(ks[7], (1, D)),
        g1=1.0 + w(ks[8], (1, D), 0.05), be1=w(ks[9], (1, D), 0.05),
        w1=w(ks[10], (D, D_HID)), b1=w(ks[11], (1, D_HID)),
        w2=w(ks[12], (D_HID, D)), b2=w(ks[13], (1, D)),
        g2=1.0 + w(ks[14], (1, D), 0.05), be2=w(ks[15], (1, D), 0.05),
    )

    x = jax.random.normal(ks[16], (B, S, D), jnp.float32)
    # Lower-triangular mask exercises the masked_fill path.
    mask = jnp.tile(jnp.tril(jnp.ones((S, S), jnp.float32))[None], (B, 1, 1))

    out = encoder_layer_forward(x, mask, params, num_heads=H)
    out = jax.block_until_ready(out)

    ref = _reference_encoder_layer(x, mask, params, num_heads=H)
    assert out.shape == (B, S, D)
    max_err = float(jnp.max(jnp.abs(out - ref)))
    assert jnp.allclose(out, ref, atol=3e-4, rtol=3e-4), f"mismatch, max|err|={max_err}"

    print("KERNEL_OK")
</pallas_src>

<mosaic_0001>
module attributes {stable_mosaic.version = 11 : i64} {
  func.func @_encoder_layer_kernel(%arg0: i32, %arg1: memref<1x8x32xf32, #tpu.memory_space<vmem>>, %arg2: memref<1x8x8xf32, #tpu.memory_space<vmem>>, %arg3: memref<32x96xf32, #tpu.memory_space<vmem>>, %arg4: memref<1x96xf32, #tpu.memory_space<vmem>>, %arg5: memref<32x32xf32, #tpu.memory_space<vmem>>, %arg6: memref<1x32xf32, #tpu.memory_space<vmem>>, %arg7: memref<1x32xf32, #tpu.memory_space<vmem>>, %arg8: memref<1x32xf32, #tpu.memory_space<vmem>>, %arg9: memref<32x64xf32, #tpu.memory_space<vmem>>, %arg10: memref<1x64xf32, #tpu.memory_space<vmem>>, %arg11: memref<64x32xf32, #tpu.memory_space<vmem>>, %arg12: memref<1x32xf32, #tpu.memory_space<vmem>>, %arg13: memref<1x32xf32, #tpu.memory_space<vmem>>, %arg14: memref<1x32xf32, #tpu.memory_space<vmem>>, %arg15: memref<1x8x32xf32, #tpu.memory_space<vmem>>) attributes {dimension_semantics = [#tpu.dimension_semantics<parallel>], iteration_bounds = array<i64: 2>, scalar_prefetch = 0 : i64, scratch_operands = 0 : i64, tpu.core_type = #tpu.core_type<tc>, window_params = [{transform_indices = @transform_0, window_bounds = array<i64: 1, 8, 32>}, {transform_indices = @transform_1, window_bounds = array<i64: 1, 8, 8>}, {pipeline_mode = #tpu.pipeline_mode<synchronous>, transform_indices = @transform_2, window_bounds = array<i64: 32, 96>}, {pipeline_mode = #tpu.pipeline_mode<synchronous>, transform_indices = @transform_3, window_bounds = array<i64: 1, 96>}, {pipeline_mode = #tpu.pipeline_mode<synchronous>, transform_indices = @transform_4, window_bounds = array<i64: 32, 32>}, {pipeline_mode = #tpu.pipeline_mode<synchronous>, transform_indices = @transform_5, window_bounds = array<i64: 1, 32>}, {pipeline_mode = #tpu.pipeline_mode<synchronous>, transform_indices = @transform_6, window_bounds = array<i64: 1, 32>}, {pipeline_mode = #tpu.pipeline_mode<synchronous>, transform_indices = @transform_7, window_bounds = array<i64: 1, 32>}, {pipeline_mode = #tpu.pipeline_mode<synchronous>, transform_indices = @transform_8, window_bounds = array<i64: 32, 64>}, {pipeline_mode = #tpu.pipeline_mode<synchronous>, transform_indices = @transform_9, window_bounds = array<i64: 1, 64>}, {pipeline_mode = #tpu.pipeline_mode<synchronous>, transform_indices = @transform_10, window_bounds = array<i64: 64, 32>}, {pipeline_mode = #tpu.pipeline_mode<synchronous>, transform_indices = @transform_11, window_bounds = array<i64: 1, 32>}, {pipeline_mode = #tpu.pipeline_mode<synchronous>, transform_indices = @transform_12, window_bounds = array<i64: 1, 32>}, {pipeline_mode = #tpu.pipeline_mode<synchronous>, transform_indices = @transform_13, window_bounds = array<i64: 1, 32>}, {transform_indices = @transform_14, window_bounds = array<i64: 1, 8, 32>}]} {
    %c0 = arith.constant 0 : index
    %c0_0 = arith.constant 0 : index
    %c0_1 = arith.constant 0 : index
    %0 = vector.load %arg1[%c0, %c0_0, %c0_1] : memref<1x8x32xf32, #tpu.memory_space<vmem>>, vector<1x8x32xf32>
    %1 = vector.shape_cast %0 : vector<1x8x32xf32> to vector<8x32xf32>
    %c0_2 = arith.constant 0 : index
    %c0_3 = arith.constant 0 : index
    %c0_4 = arith.constant 0 : index
    %2 = vector.load %arg2[%c0_2, %c0_3, %c0_4] : memref<1x8x8xf32, #tpu.memory_space<vmem>>, vector<1x8x8xf32>
    %3 = vector.shape_cast %2 : vector<1x8x8xf32> to vector<8x8xf32>
    %cst = arith.constant 0.000000e+00 : f32
    %4 = vector.broadcast %cst : f32 to vector<8x8xf32>
    %5 = arith.cmpf oeq, %3, %4 : vector<8x8xf32>
    %c0_5 = arith.constant 0 : index
    %c0_6 = arith.constant 0 : index
    %6 = vector.load %arg7[%c0_5, %c0_6] : memref<1x32xf32, #tpu.memory_space<vmem>>, vector<1x32xf32>
    %c0_7 = arith.constant 0 : index
    %c0_8 = arith.constant 0 : index
    %7 = vector.load %arg8[%c0_7, %c0_8] : memref<1x32xf32, #tpu.memory_space<vmem>>, vector<1x32xf32>
    %cst_9 = arith.constant dense<0.000000e+00> : vector<8xf32>
    %8 = vector.multi_reduction <add>, %1, %cst_9 [1] : vector<8x32xf32> to vector<8xf32>
    %9 = vector.shape_cast %8 : vector<8xf32> to vector<8x1xf32>
    %cst_10 = arith.constant 3.200000e+01 : f32
    %10 = vector.broadcast %cst_10 : f32 to vector<8x1xf32>
    %11 = arith.divf %9, %10 : vector<8x1xf32>
    %12 = vector.broadcast %11 : vector<8x1xf32> to vector<8x32xf32>
    %13 = arith.subf %1, %12 : vector<8x32xf32>
    %14 = arith.mulf %13, %13 : vector<8x32xf32>
    %cst_11 = arith.constant dense<0.000000e+00> : vector<8xf32>
    %15 = vector.multi_reduction <add>, %14, %cst_11 [1] : vector<8x32xf32> to vector<8xf32>
    %16 = vector.shape_cast %15 : vector<8xf32> to vector<8x1xf32>
    %cst_12 = arith.constant 0.0322580636 : f32
    %17 = vector.broadcast %cst_12 : f32 to vector<8x1xf32>
    %18 = arith.mulf %16, %17 : vector<8x1xf32>
    %19 = vector.broadcast %6 : vector<1x32xf32> to vector<8x32xf32>
    %20 = arith.mulf %19, %13 : vector<8x32xf32>
    %21 = math.sqrt %18 : vector<8x1xf32>
    %cst_13 = arith.constant 9.99999997E-7 : f32
    %22 = vector.broadcast %cst_13 : f32 to vector<8x1xf32>
    %23 = arith.addf %21, %22 : vector<8x1xf32>
    %24 = vector.broadcast %23 : vector<8x1xf32> to vector<8x32xf32>
    %25 = arith.divf %20, %24 : vector<8x32xf32>
    %26 = vector.broadcast %7 : vector<1x32xf32> to vector<8x32xf32>
    %27 = arith.addf %25, %26 : vector<8x32xf32>
    %c0_14 = arith.constant 0 : index
    %c0_15 = arith.constant 0 : index
    %28 = vector.load %arg3[%c0_14, %c0_15] : memref<32x96xf32, #tpu.memory_space<vmem>>, vector<32x96xf32>
    %cst_16 = arith.constant dense<0.000000e+00> : vector<8x96xf32>
    %29 = tpu.matmul %27, %28, %cst_16 {dimension_numbers = #tpu.dot_dimension_numbers<[1], [0], [0], [1], [0, 0, 1, 1], [], []>} : vector<8x32xf32>, vector<32x96xf32>, vector<8x96xf32> -> vector<8x96xf32>
    %c0_17 = arith.constant 0 : index
    %c0_18 = arith.constant 0 : index
    %30 = vector.load %arg4[%c0_17, %c0_18] : memref<1x96xf32, #tpu.memory_space<vmem>>, vector<1x96xf32>
    %31 = vector.broadcast %30 : vector<1x96xf32> to vector<8x96xf32>
    %32 = arith.addf %29, %31 : vector<8x96xf32>
    %c0_19 = arith.constant 0 : index
    %c0_20 = arith.constant 0 : index
    %33 = vector.load %arg5[%c0_19, %c0_20] : memref<32x32xf32, #tpu.memory_space<vmem>>, vector<32x32xf32>
    %cst_21 = arith.constant 0.000000e+00 : f32
    %34 = vector.broadcast %cst_21 : f32 to vector<8x32xf32>
    %35 = vector.extract_strided_slice %32 {offsets = [0, 0], sizes = [8, 8], strides = [1, 1]} : vector<8x96xf32> to vector<8x8xf32>
    %36 = vector.extract_strided_slice %32 {offsets = [0, 32], sizes = [8, 8], strides = [1, 1]} : vector<8x96xf32> to vector<8x8xf32>
    %37 = vector.extract_strided_slice %32 {offsets = [0, 64], sizes = [8, 8], strides = [1, 1]} : vector<8x96xf32> to vector<8x8xf32>
    %cst_22 = arith.constant dense<0.000000e+00> : vector<8x8xf32>
    %38 = tpu.matmul %35, %36, %cst_22 {dimension_numbers = #tpu.dot_dimension_numbers<[1], [1], [0], [0], [0, 0, 1, 0], [], []>} : vector<8x8xf32>, vector<8x8xf32>, vector<8x8xf32> -> vector<8x8xf32>
    %cst_23 = arith.constant 0.353553385 : f32
    %39 = vector.broadcast %cst_23 : f32 to vector<8x8xf32>
    %40 = arith.mulf %38, %39 : vector<8x8xf32>
    %cst_24 = arith.constant -1.000000e+09 : f32
    %41 = vector.broadcast %cst_24 : f32 to vector<8x8xf32>
    %42 = arith.select %5, %41, %40 : vector<8x8xi1>, vector<8x8xf32>
    %cst_25 = arith.constant dense<0xFF800000> : vector<8xf32>
    %43 = vector.multi_reduction <maximumf>, %42, %cst_25 [1] : vector<8x8xf32> to vector<8xf32>
    %44 = vector.shape_cast %43 : vector<8xf32> to vector<8x1xf32>
    %45 = vector.broadcast %44 : vector<8x1xf32> to vector<8x8xf32>
    %46 = arith.subf %42, %45 : vector<8x8xf32>
    %47 = math.exp %46 : vector<8x8xf32>
    %cst_26 = arith.constant dense<0.000000e+00> : vector<8xf32>
    %48 = vector.multi_reduction <add>, %47, %cst_26 [1] : vector<8x8xf32> to vector<8xf32>
    %49 = vector.shape_cast %48 : vector<8xf32> to vector<8x1xf32>
    %50 = vector.broadcast %49 : vector<8x1xf32> to vector<8x8xf32>
    %51 = arith.divf %47, %50 : vector<8x8xf32>
    %cst_27 = arith.constant dense<0.000000e+00> : vector<8x8xf32>
    %52 = tpu.matmul %51, %37, %cst_27 {dimension_numbers = #tpu.dot_dimension_numbers<[1], [0], [0], [1], [0, 0, 1, 1], [], []>} : vector<8x8xf32>, vector<8x8xf32>, vector<8x8xf32> -> vector<8x8xf32>
    %53 = vector.extract_strided_slice %33 {offsets = [0, 0], sizes = [8, 32], strides = [1, 1]} : vector<32x32xf32> to vector<8x32xf32>
    %cst_28 = arith.constant dense<0.000000e+00> : vector<8x32xf32>
    %54 = tpu.matmul %52, %53, %cst_28 {dimension_numbers = #tpu.dot_dimension_numbers<[1], [0], [0], [1], [0, 0, 1, 1], [], []>} : vector<8x8xf32>, vector<8x32xf32>, vector<8x32xf32> -> vector<8x32xf32>
    %55 = arith.addf %34, %54 : vector<8x32xf32>
    %56 = vector.extract_strided_slice %32 {offsets = [0, 8], sizes = [8, 8], strides = [1, 1]} : vector<8x96xf32> to vector<8x8xf32>
    %57 = vector.extract_strided_slice %32 {offsets = [0, 40], sizes = [8, 8], strides = [1, 1]} : vector<8x96xf32> to vector<8x8xf32>
    %58 = vector.extract_strided_slice %32 {offsets = [0, 72], sizes = [8, 8], strides = [1, 1]} : vector<8x96xf32> to vector<8x8xf32>
    %cst_29 = arith.constant dense<0.000000e+00> : vector<8x8xf32>
    %59 = tpu.matmul %56, %57, %cst_29 {dimension_numbers = #tpu.dot_dimension_numbers<[1], [1], [0], [0], [0, 0, 1, 0], [], []>} : vector<8x8xf32>, vector<8x8xf32>, vector<8x8xf32> -> vector<8x8xf32>
    %cst_30 = arith.constant 0.353553385 : f32
    %60 = vector.broadcast %cst_30 : f32 to vector<8x8xf32>
    %61 = arith.mulf %59, %60 : vector<8x8xf32>
    %cst_31 = arith.constant -1.000000e+09 : f32
    %62 = vector.broadcast %cst_31 : f32 to vector<8x8xf32>
    %63 = arith.select %5, %62, %61 : vector<8x8xi1>, vector<8x8xf32>
    %cst_32 = arith.constant dense<0xFF800000> : vector<8xf32>
    %64 = vector.multi_reduction <maximumf>, %63, %cst_32 [1] : vector<8x8xf32> to vector<8xf32>
    %65 = vector.shape_cast %64 : vector<8xf32> to vector<8x1xf32>
    %66 = vector.broadcast %65 : vector<8x1xf32> to vector<8x8xf32>
    %67 = arith.subf %63, %66 : vector<8x8xf32>
    %68 = math.exp %67 : vector<8x8xf32>
    %cst_33 = arith.constant dense<0.000000e+00> : vector<8xf32>
    %69 = vector.multi_reduction <add>, %68, %cst_33 [1] : vector<8x8xf32> to vector<8xf32>
    %70 = vector.shape_cast %69 : vector<8xf32> to vector<8x1xf32>
    %71 = vector.broadcast %70 : vector<8x1xf32> to vector<8x8xf32>
    %72 = arith.divf %68, %71 : vector<8x8xf32>
    %cst_34 = arith.constant dense<0.000000e+00> : vector<8x8xf32>
    %73 = tpu.matmul %72, %58, %cst_34 {dimension_numbers = #tpu.dot_dimension_numbers<[1], [0], [0], [1], [0, 0, 1, 1], [], []>} : vector<8x8xf32>, vector<8x8xf32>, vector<8x8xf32> -> vector<8x8xf32>
    %74 = vector.extract_strided_slice %33 {offsets = [8, 0], sizes = [8, 32], strides = [1, 1]} : vector<32x32xf32> to vector<8x32xf32>
    %cst_35 = arith.constant dense<0.000000e+00> : vector<8x32xf32>
    %75 = tpu.matmul %73, %74, %cst_35 {dimension_numbers = #tpu.dot_dimension_numbers<[1], [0], [0], [1], [0, 0, 1, 1], [], []>} : vector<8x8xf32>, vector<8x32xf32>, vector<8x32xf32> -> vector<8x32xf32>
    %76 = arith.addf %55, %75 : vector<8x32xf32>
    %77 = vector.extract_strided_slice %32 {offsets = [0, 16], sizes = [8, 8], strides = [1, 1]} : vector<8x96xf32> to vector<8x8xf32>
    %78 = vector.extract_strided_slice %32 {offsets = [0, 48], sizes = [8, 8], strides = [1, 1]} : vector<8x96xf32> to vector<8x8xf32>
    %79 = vector.extract_strided_slice %32 {offsets = [0, 80], sizes = [8, 8], strides = [1, 1]} : vector<8x96xf32> to vector<8x8xf32>
    %cst_36 = arith.constant dense<0.000000e+00> : vector<8x8xf32>
    %80 = tpu.matmul %77, %78, %cst_36 {dimension_numbers = #tpu.dot_dimension_numbers<[1], [1], [0], [0], [0, 0, 1, 0], [], []>} : vector<8x8xf32>, vector<8x8xf32>, vector<8x8xf32> -> vector<8x8xf32>
    %cst_37 = arith.constant 0.353553385 : f32
    %81 = vector.broadcast %cst_37 : f32 to vector<8x8xf32>
    %82 = arith.mulf %80, %81 : vector<8x8xf32>
    %cst_38 = arith.constant -1.000000e+09 : f32
    %83 = vector.broadcast %cst_38 : f32 to vector<8x8xf32>
    %84 = arith.select %5, %83, %82 : vector<8x8xi1>, vector<8x8xf32>
    %cst_39 = arith.constant dense<0xFF800000> : vector<8xf32>
    %85 = vector.multi_reduction <maximumf>, %84, %cst_39 [1] : vector<8x8xf32> to vector<8xf32>
    %86 = vector.shape_cast %85 : vector<8xf32> to vector<8x1xf32>
    %87 = vector.broadcast %86 : vector<8x1xf32> to vector<8x8xf32>
    %88 = arith.subf %84, %87 : vector<8x8xf32>
    %89 = math.exp %88 : vector<8x8xf32>
    %cst_40 = arith.constant dense<0.000000e+00> : vector<8xf32>
    %90 = vector.multi_reduction <add>, %89, %cst_40 [1] : vector<8x8xf32> to vector<8xf32>
    %91 = vector.shape_cast %90 : vector<8xf32> to vector<8x1xf32>
    %92 = vector.broadcast %91 : vector<8x1xf32> to vector<8x8xf32>
    %93 = arith.divf %89, %92 : vector<8x8xf32>
    %cst_41 = arith.constant dense<0.000000e+00> : vector<8x8xf32>
    %94 = tpu.matmul %93, %79, %cst_41 {dimension_numbers = #tpu.dot_dimension_numbers<[1], [0], [0], [1], [0, 0, 1, 1], [], []>} : vector<8x8xf32>, vector<8x8xf32>, vector<8x8xf32> -> vector<8x8xf32>
    %95 = vector.extract_strided_slice %33 {offsets = [16, 0], sizes = [8, 32], strides = [1, 1]} : vector<32x32xf32> to vector<8x32xf32>
    %cst_42 = arith.constant dense<0.000000e+00> : vector<8x32xf32>
    %96 = tpu.matmul %94, %95, %cst_42 {dimension_numbers = #tpu.dot_dimension_numbers<[1], [0], [0], [1], [0, 0, 1, 1], [], []>} : vector<8x8xf32>, vector<8x32xf32>, vector<8x32xf32> -> vector<8x32xf32>
    %97 = arith.addf %76, %96 : vector<8x32xf32>
    %98 = vector.extract_strided_slice %32 {offsets = [0, 24], sizes = [8, 8], strides = [1, 1]} : vector<8x96xf32> to vector<8x8xf32>
    %99 = vector.extract_strided_slice %32 {offsets = [0, 56], sizes = [8, 8], strides = [1, 1]} : vector<8x96xf32> to vector<8x8xf32>
    %100 = vector.extract_strided_slice %32 {offsets = [0, 88], sizes = [8, 8], strides = [1, 1]} : vector<8x96xf32> to vector<8x8xf32>
    %cst_43 = arith.constant dense<0.000000e+00> : vector<8x8xf32>
    %101 = tpu.matmul %98, %99, %cst_43 {dimension_numbers = #tpu.dot_dimension_numbers<[1], [1], [0], [0], [0, 0, 1, 0], [], []>} : vector<8x8xf32>, vector<8x8xf32>, vector<8x8xf32> -> vector<8x8xf32>
    %cst_44 = arith.constant 0.353553385 : f32
    %102 = vector.broadcast %cst_44 : f32 to vector<8x8xf32>
    %103 = arith.mulf %101, %102 : vector<8x8xf32>
    %cst_45 = arith.constant -1.000000e+09 : f32
    %104 = vector.broadcast %cst_45 : f32 to vector<8x8xf32>
    %105 = arith.select %5, %104, %103 : vector<8x8xi1>, vector<8x8xf32>
    %cst_46 = arith.constant dense<0xFF800000> : vector<8xf32>
    %106 = vector.multi_reduction <maximumf>, %105, %cst_46 [1] : vector<8x8xf32> to vector<8xf32>
    %107 = vector.shape_cast %106 : vector<8xf32> to vector<8x1xf32>
    %108 = vector.broadcast %107 : vector<8x1xf32> to vector<8x8xf32>
    %109 = arith.subf %105, %108 : vector<8x8xf32>
    %110 = math.exp %109 : vector<8x8xf32>
    %cst_47 = arith.constant dense<0.000000e+00> : vector<8xf32>
    %111 = vector.multi_reduction <add>, %110, %cst_47 [1] : vector<8x8xf32> to vector<8xf32>
    %112 = vector.shape_cast %111 : vector<8xf32> to vector<8x1xf32>
    %113 = vector.broadcast %112 : vector<8x1xf32> to vector<8x8xf32>
    %114 = arith.divf %110, %113 : vector<8x8xf32>
    %cst_48 = arith.constant dense<0.000000e+00> : vector<8x8xf32>
    %115 = tpu.matmul %114, %100, %cst_48 {dimension_numbers = #tpu.dot_dimension_numbers<[1], [0], [0], [1], [0, 0, 1, 1], [], []>} : vector<8x8xf32>, vector<8x8xf32>, vector<8x8xf32> -> vector<8x8xf32>
    %116 = vector.extract_strided_slice %33 {offsets = [24, 0], sizes = [8, 32], strides = [1, 1]} : vector<32x32xf32> to vector<8x32xf32>
    %cst_49 = arith.constant dense<0.000000e+00> : vector<8x32xf32>
    %117 = tpu.matmul %115, %116, %cst_49 {dimension_numbers = #tpu.dot_dimension_numbers<[1], [0], [0], [1], [0, 0, 1, 1], [], []>} : vector<8x8xf32>, vector<8x32xf32>, vector<8x32xf32> -> vector<8x32xf32>
    %118 = arith.addf %97, %117 : vector<8x32xf32>
    %119 = arith.addf %1, %118 : vector<8x32xf32>
    %c0_50 = arith.constant 0 : index
    %c0_51 = arith.constant 0 : index
    %120 = vector.load %arg6[%c0_50, %c0_51] : memref<1x32xf32, #tpu.memory_space<vmem>>, vector<1x32xf32>
    %121 = vector.broadcast %120 : vector<1x32xf32> to vector<8x32xf32>
    %122 = arith.addf %119, %121 : vector<8x32xf32>
    %c0_52 = arith.constant 0 : index
    %c0_53 = arith.constant 0 : index
    %123 = vector.load %arg13[%c0_52, %c0_53] : memref<1x32xf32, #tpu.memory_space<vmem>>, vector<1x32xf32>
    %c0_54 = arith.constant 0 : index
    %c0_55 = arith.constant 0 : index
    %124 = vector.load %arg14[%c0_54, %c0_55] : memref<1x32xf32, #tpu.memory_space<vmem>>, vector<1x32xf32>
    %cst_56 = arith.constant dense<0.000000e+00> : vector<8xf32>
    %125 = vector.multi_reduction <add>, %122, %cst_56 [1] : vector<8x32xf32> to vector<8xf32>
    %126 = vector.shape_cast %125 : vector<8xf32> to vector<8x1xf32>
    %cst_57 = arith.constant 3.200000e+01 : f32
    %127 = vector.broadcast %cst_57 : f32 to vector<8x1xf32>
    %128 = arith.divf %126, %127 : vector<8x1xf32>
    %129 = vector.broadcast %128 : vector<8x1xf32> to vector<8x32xf32>
    %130 = arith.subf %122, %129 : vector<8x32xf32>
    %131 = arith.mulf %130, %130 : vector<8x32xf32>
    %cst_58 = arith.constant dense<0.000000e+00> : vector<8xf32>
    %132 = vector.multi_reduction <add>, %131, %cst_58 [1] : vector<8x32xf32> to vector<8xf32>
    %133 = vector.shape_cast %132 : vector<8xf32> to vector<8x1xf32>
    %cst_59 = arith.constant 0.0322580636 : f32
    %134 = vector.broadcast %cst_59 : f32 to vector<8x1xf32>
    %135 = arith.mulf %133, %134 : vector<8x1xf32>
    %136 = vector.broadcast %123 : vector<1x32xf32> to vector<8x32xf32>
    %137 = arith.mulf %136, %130 : vector<8x32xf32>
    %138 = math.sqrt %135 : vector<8x1xf32>
    %cst_60 = arith.constant 9.99999997E-7 : f32
    %139 = vector.broadcast %cst_60 : f32 to vector<8x1xf32>
    %140 = arith.addf %138, %139 : vector<8x1xf32>
    %141 = vector.broadcast %140 : vector<8x1xf32> to vector<8x32xf32>
    %142 = arith.divf %137, %141 : vector<8x32xf32>
    %143 = vector.broadcast %124 : vector<1x32xf32> to vector<8x32xf32>
    %144 = arith.addf %142, %143 : vector<8x32xf32>
    %c0_61 = arith.constant 0 : index
    %c0_62 = arith.constant 0 : index
    %145 = vector.load %arg9[%c0_61, %c0_62] : memref<32x64xf32, #tpu.memory_space<vmem>>, vector<32x64xf32>
    %cst_63 = arith.constant dense<0.000000e+00> : vector<8x64xf32>
    %146 = tpu.matmul %144, %145, %cst_63 {dimension_numbers = #tpu.dot_dimension_numbers<[1], [0], [0], [1], [0, 0, 1, 1], [], []>} : vector<8x32xf32>, vector<32x64xf32>, vector<8x64xf32> -> vector<8x64xf32>
    %c0_64 = arith.constant 0 : index
    %c0_65 = arith.constant 0 : index
    %147 = vector.load %arg10[%c0_64, %c0_65] : memref<1x64xf32, #tpu.memory_space<vmem>>, vector<1x64xf32>
    %148 = vector.broadcast %147 : vector<1x64xf32> to vector<8x64xf32>
    %149 = arith.addf %146, %148 : vector<8x64xf32>
    %cst_66 = arith.constant 0.000000e+00 : f32
    %150 = vector.broadcast %cst_66 : f32 to vector<8x64xf32>
    %151 = arith.maximumf %149, %150 : vector<8x64xf32>
    %c0_67 = arith.constant 0 : index
    %c0_68 = arith.constant 0 : index
    %152 = vector.load %arg11[%c0_67, %c0_68] : memref<64x32xf32, #tpu.memory_space<vmem>>, vector<64x32xf32>
    %cst_69 = arith.constant dense<0.000000e+00> : vector<8x32xf32>
    %153 = tpu.matmul %151, %152, %cst_69 {dimension_numbers = #tpu.dot_dimension_numbers<[1], [0], [0], [1], [0, 0, 1, 1], [], []>} : vector<8x64xf32>, vector<64x32xf32>, vector<8x32xf32> -> vector<8x32xf32>
    %c0_70 = arith.constant 0 : index
    %c0_71 = arith.constant 0 : index
    %154 = vector.load %arg12[%c0_70, %c0_71] : memref<1x32xf32, #tpu.memory_space<vmem>>, vector<1x32xf32>
    %155 = vector.broadcast %154 : vector<1x32xf32> to vector<8x32xf32>
    %156 = arith.addf %153, %155 : vector<8x32xf32>
    %157 = arith.addf %122, %156 : vector<8x32xf32>
    %c0_72 = arith.constant 0 : index
    %c0_73 = arith.constant 0 : index
    %c0_74 = arith.constant 0 : index
    %158 = vector.load %arg15[%c0_72, %c0_73, %c0_74] : memref<1x8x32xf32, #tpu.memory_space<vmem>>, vector<1x8x32xf32>
    %159 = vector.shape_cast %158 : vector<1x8x32xf32> to vector<8x32xf32>
    %160 = vector.shape_cast %157 : vector<8x32xf32> to vector<1x8x32xf32>
    tpu.vector_store %arg15[%c0_72, %c0_73, %c0_74], %160 {strides = array<i32>} : memref<1x8x32xf32, #tpu.memory_space<vmem>>, vector<1x8x32xf32>,
    return
  }
  func.func @transform_0(%arg0: i32) -> (i32, i32, i32) {
    %c0_i32 = arith.constant 0 : i32
    %c0_i32_0 = arith.constant 0 : i32
    %c0_i32_1 = arith.constant 0 : i32
    return %arg0, %c0_i32, %c0_i32_0 : i32, i32, i32
  }
  func.func @transform_1(%arg0: i32) -> (i32, i32, i32) {
    %c0_i32 = arith.constant 0 : i32
    %c0_i32_0 = arith.constant 0 : i32
    %c0_i32_1 = arith.constant 0 : i32
    return %arg0, %c0_i32, %c0_i32_0 : i32, i32, i32
  }
  func.func @transform_2(%arg0: i32) -> (i32, i32) {
    %c0_i32 = arith.constant 0 : i32
    %c0_i32_0 = arith.constant 0 : i32
    %c0_i32_1 = arith.constant 0 : i32
    return %c0_i32, %c0_i32_0 : i32, i32
  }
  func.func @transform_3(%arg0: i32) -> (i32, i32) {
    %c0_i32 = arith.constant 0 : i32
    %c0_i32_0 = arith.constant 0 : i32
    %c0_i32_1 = arith.constant 0 : i32
    return %c0_i32, %c0_i32_0 : i32, i32
  }
  func.func @transform_4(%arg0: i32) -> (i32, i32) {
    %c0_i32 = arith.constant 0 : i32
    %c0_i32_0 = arith.constant 0 : i32
    %c0_i32_1 = arith.constant 0 : i32
    return %c0_i32, %c0_i32_0 : i32, i32
  }
  func.func @transform_5(%arg0: i32) -> (i32, i32) {
    %c0_i32 = arith.constant 0 : i32
    %c0_i32_0 = arith.constant 0 : i32
    %c0_i32_1 = arith.constant 0 : i32
    return %c0_i32, %c0_i32_0 : i32, i32
  }
  func.func @transform_6(%arg0: i32) -> (i32, i32) {
    %c0_i32 = arith.constant 0 : i32
    %c0_i32_0 = arith.constant 0 : i32
    %c0_i32_1 = arith.constant 0 : i32
    return %c0_i32, %c0_i32_0 : i32, i32
  }
  func.func @transform_7(%arg0: i32) -> (i32, i32) {
    %c0_i32 = arith.constant 0 : i32
    %c0_i32_0 = arith.constant 0 : i32
    %c0_i32_1 = arith.constant 0 : i32
    return %c0_i32, %c0_i32_0 : i32, i32
  }
  func.func @transform_8(%arg0: i32) -> (i32, i32) {
    %c0_i32 = arith.constant 0 : i32
    %c0_i32_0 = arith.constant 0 : i32
    %c0_i32_1 = arith.constant 0 : i32
    return %c0_i32, %c0_i32_0 : i32, i32
  }
  func.func @transform_9(%arg0: i32) -> (i32, i32) {
    %c0_i32 = arith.constant 0 : i32
    %c0_i32_0 = arith.constant 0 : i32
    %c0_i32_1 = arith.constant 0 : i32
    return %c0_i32, %c0_i32_0 : i32, i32
  }
  func.func @transform_10(%arg0: i32) -> (i32, i32) {
    %c0_i32 = arith.constant 0 : i32
    %c0_i32_0 = arith.constant 0 : i32
    %c0_i32_1 = arith.constant 0 : i32
    return %c0_i32, %c0_i32_0 : i32, i32
  }
  func.func @transform_11(%arg0: i32) -> (i32, i32) {
    %c0_i32 = arith.constant 0 : i32
    %c0_i32_0 = arith.constant 0 : i32
    %c0_i32_1 = arith.constant 0 : i32
    return %c0_i32, %c0_i32_0 : i32, i32
  }
  func.func @transform_12(%arg0: i32) -> (i32, i32) {
    %c0_i32 = arith.constant 0 : i32
    %c0_i32_0 = arith.constant 0 : i32
    %c0_i32_1 = arith.constant 0 : i32
    return %c0_i32, %c0_i32_0 : i32, i32
  }
  func.func @transform_13(%arg0: i32) -> (i32, i32) {
    %c0_i32 = arith.constant 0 : i32
    %c0_i32_0 = arith.constant 0 : i32
    %c0_i32_1 = arith.constant 0 : i32
    return %c0_i32, %c0_i32_0 : i32, i32
  }
  func.func @transform_14(%arg0: i32) -> (i32, i32, i32) {
    %c0_i32 = arith.constant 0 : i32
    %c0_i32_0 = arith.constant 0 : i32
    %c0_i32_1 = arith.constant 0 : i32
    return %arg0, %c0_i32, %c0_i32_0 : i32, i32, i32
  }
}

</mosaic_0001>

<bundles_post_ra>
// kernel: tpu_custom_call.1
= control target key start
LH: loop header
LB: loop body
LE: loop exit
PB: predicated region body
PF: predicated region fallthrough
CT: control target
= control target key end

     0   :  { %s2839_s0 = inlined_call_operand.hbm [shape: f32[2,8,32], index: 0, kind: input, shape index: {}]   ;;  %s2840_s1 = inlined_call_operand.hbm [shape: f32[2,8,8], index: 1, kind: input, shape index: {}]   ;;  %s2841_s2 = inlined_call_operand.vmem [shape: f32[32,96], index: 2, kind: input, shape index: {}]   ;;  %s2842_s3 = inlined_call_operand.vmem [shape: f32[1,96], index: 3, kind: input, shape index: {}]   ;;  %s2843_s4 = inlined_call_operand.vmem [shape: f32[32,32], index: 4, kind: input, shape index: {}]   ;;  %s2844_s5 = inlined_call_operand.vmem [shape: f32[1,32], index: 5, kind: input, shape index: {}]   ;;  %s2845_s6 = inlined_call_operand.vmem [shape: f32[1,32], index: 6, kind: input, shape index: {}]   ;;  %s2846_s7 = inlined_call_operand.vmem [shape: f32[1,32], index: 7, kind: input, shape index: {}]   ;;  %s2847_s8 = inlined_call_operand.vmem [shape: f32[32,64], index: 8, kind: input, shape index: {}]   ;;  %s2848_s9 = inlined_call_operand.vmem [shape: f32[1,64], index: 9, kind: input, shape index: {}]   ;;  %s2849_s10 = inlined_call_operand.vmem [shape: f32[64,32], index: 10, kind: input, shape index: {}]   ;;  %s2850_s11 = inlined_call_operand.vmem [shape: f32[1,32], index: 11, kind: input, shape index: {}]   ;;  %s2851_s12 = inlined_call_operand.vmem [shape: f32[1,32], index: 12, kind: input, shape index: {}]   ;;  %s2852_s13 = inlined_call_operand.vmem [shape: f32[1,32], index: 13, kind: input, shape index: {}]   ;;  %s2853_s14 = inlined_call_operand.hbm [shape: f32[2,8,32], index: 14, kind: output, shape index: {}]  }
   0x1   :  { %2864 = sst [smem:[#allocation16_spill]] %s2839_s0 }
   0x2   :  { %2865 = sst [smem:[#allocation17_spill]] %s2850_s11 }
   0x3   :  { %2866 = sst [smem:[#allocation18_spill]] %s2853_s14 }
   0x4   :  { %19 = vsyncpa [#allocation3], 0 }
   0x5   :  { %21 = vsyncpa [#allocation3 + $0x1], 0 }
   0x6   :  { %22 = vsyncpa [#allocation6], 0 }
   0x7   :  { %24 = vsyncpa [#allocation6 + $0x1], 0 }
   0x8   :  { %25 = vsyncpa [#allocation4], 0 }
   0x9   :  { %27 = vsyncpa [#allocation4 + $0x1], 0  ;;  %s2430_s29 = smov 0   ;;  %s2432_s30 = smov 0  }
   0xa   :  { %s2434_s15 = smov 0   ;;  %s2436_s16 = smov 0  }
   0xb LB: > { %2867 = sst [smem:[#allocation11_spill]] %s2325_s29  ;;  %s2451_s17 = sadd.s32 4294967295, %s2337_s16   ;;  %s2337_s16 = sphi %s2436_s16, %s2892_s16   ;;  %s2333_s15 = sphi %s2434_s15, %s2894_s15   ;;  %s2329_s30 = sphi %s2432_s30, %s2896_s30   ;;  %s2325_s29 = sphi %s2430_s29, %s2895_s29  }
   0xc   : > { %2868 = sst [smem:[#allocation12_spill]] %s2333_s15  ;;  %s1939_s18 = sadd.s32 4294967294, %s2337_s16  }
   0xd   : > { %s2455_s19 = sadd.s32 1, %s2337_s16   ;;  %s40_s20 = sadd.s32 1, %s2333_s15 }
   0xe   : > { %2869 = sst [smem:[#allocation13_spill]] %s2455_s19  ;;  %s37_s21 = ssub.s32 %s2337_s16, %s2455_s19 }
   0xf   : > { %p47_p0 = scmp.ne.s32.totalorder %s2333_s15, %s2329_s30  ;;  %p38_p1 = scmp.eq.s32.totalorder %s37_s21, 0 }
  0x10   : > { %p48_p2 = scmp.eq.s32.totalorder %s2337_s16, 0  ;;  %p53_p3 = scmp.ne.s32.totalorder %s2329_s30, %s2325_s29 }
  0x11   : > { %p54_p4 = scmp.eq.s32.totalorder %s2451_s17, 0  ;;  %p355_p7 = scmp.eq.s32.totalorder %s2451_s17, 1 }
  0x12   : > { %s2467_s22 = scalar_select %p38_p1, %s2333_s15, %s40_s20  }
  0x13   : > { %p2469_p5 = por %p48_p2, %p47_p0  ;;  %p2473_p6 = por %p54_p4, %p53_p3 }
  0x14   : > { %2870 = sst [smem:[#allocation14_spill]] %s2467_s22  ;;  %p361_p8 = scmp.eq.s32.totalorder %s1939_s18, 1 }
  0x15   : > { %s2872_s24 = scalar_select %p2473_p6, 1, 0 }
  0x16   : > { %p2142_p10 = scmp.lt.s32.totalorder %s2337_s16, 2  ;;  %p2480_p11 = por %p355_p7, %p47_p0 }
  0x17   : > { %p2484_p12 = por %p361_p8, %p53_p3  ;;  %s2489_s27 = sand.u32 1, %s2333_s15  }
  0x18   : > { %s2873_s25 = scalar_select %p2480_p11, 1, 0 }
  0x19   : > { %s2874_s26 = scalar_select %p2484_p12, 1, 0 }
  0x1a   : > { %s2859_s28 = sshll.u32 %s2337_s16, 7  ;;  %s2858_s20 = sshll.u32 %s2489_s27, 3 }
  0x1b   : > { %2875 = sst [smem:[#allocation15_spill]] %s2874_s26  ;;  %s421_s19 = scalar_lea.vmem [#allocation2], %s2858_s20 }
  0x1c   : > { %s2876_s0 = sld [smem:[#allocation16_spill]]  ;;  %s428_s29 = sshll.u32 %s421_s19, 4  ;;  %s2508_s29 = int_to_ptr.vmem [resolvable:$true] %s428_s29 }
  0x1d   : > { %p2504_p13 = pnand %p2142_p10, %p2469_p5  ;;  %s418_s21 = scalar_lea.sflag [#allocation3], %s2489_s27 }
  0x1f   : > { %p2215_p3 = pneg %p2504_p13 }
  0x22   : > { %s2498_s22 = scalar_lea.hbm %s2876_s0, %s2859_s28  ;;  %s2218_s20 = scalar_lea.hbm %s2876_s0, 256 }
  0x23   : > { %s2213_s18 = scalar_lea.hbm %s2498_s22, 128  ;;  %p2219_p5 = scmp.lt.s32.totalorder %s2498_s22, %s2876_s0 }
  0x24   : > { %p2214_p2 = scmp.ne.s32.totalorder %s2498_s22, %s2213_s18  ;;  %p2220_p8 = scmp.lt.s32.totalorder %s2218_s20, %s2213_s18 }
  0x26   : > { %p2216_p4 = pnand %p2215_p3, %p2214_p2  ;;  %p2221_p10 = por %p2220_p8, %p2219_p5 }
  0x28   : > { %p2217_p7 = pneg %p2216_p4 }
  0x2a   : > { %p2222_p9 = pnand %p2221_p10, %p2217_p7 }
  0x2c   : > { %2225 = shalt.err (!%p2222_p9)
}
  0x2d   : > { %s2226_s14 = scalar_lea.vmem %s2508_s29, 128  ;;  %s2339_s19 = smov [#allocation2]  }
  0x2e   : > { %p2227_p0 = scmp.ne.s32.totalorder %s2508_s29, %s2226_s14  ;;  %s2231_s23 = sshll.u32 %s2339_s19, 4  ;;  %s2232_s23 = int_to_ptr.vmem [resolvable:$false] %s2231_s23 }
  0x2f   : > { %s2233_s11 = scalar_lea.vmem %s2232_s23, 256  ;;  %p2234_p1 = scmp.lt.s32.totalorder %s2508_s29, %s2232_s23 }
  0x30   : > { %p2229_p2 = pnand %p2227_p0, %p2215_p3  ;;  %p2235_p12 = scmp.lt.s32.totalorder %s2233_s11, %s2226_s14 }
  0x32   : > { %p2230_p4 = pneg %p2229_p2  ;;  %p2236_p11 = por %p2235_p12, %p2234_p1 }
  0x34   : > { %p2237_p5 = pnand %p2236_p11, %p2230_p4 }
  0x36   : > { %2240 = shalt.err (!%p2237_p5)
}
  0x37   : > { %2134 = dma.hbm_to_vmem [thread:$0]  (!%p2504_p13), %s2498_s22, 128, %s2508_s29, %s418_s21  }
  0x38   : > { %p2878_p9 = scmp.lt.s32.totalorder %s2337_s16, 3  ;;  %p2879_p0 = scmp.ge.s32.totalorder %s2337_s16, 1 }
  0x39   : > { %s2881_s11 = sshll.u32 %s2337_s16, 7  ;;  %s2882_s18 = sshll.u32 %s2489_s27, 3 }
  0x3a   : > { %p2541_p7 = pnand %p2879_p0, %p2878_p9  ;;  %s2550_s20 = scalar_lea.hbm %s2840_s1, %s2881_s11 }
  0x3b   : > { %s439_s19 = scalar_lea.vmem [#allocation5], %s2882_s18  ;;  %s436_s29 = scalar_lea.sflag [#allocation6], %s2489_s27 }
  0x3c   : > { %s2880_s26 = scalar_select %p2541_p7, 1, 0 }
  0x3d   : > { %s446_s23 = sshll.u32 %s439_s19, 4  ;;  %s2241_s22 = scalar_lea.hbm %s2550_s20, 128  ;;  %s447_s23 = int_to_ptr.vmem [resolvable:$true] %s446_s23 }
  0x3e   : > { %p2242_p11 = scmp.ne.s32.totalorder %s2550_s20, %s2241_s22  ;;  %s2246_s14 = scalar_lea.hbm %s2840_s1, 256 }
  0x3f   : > { %p2247_p8 = scmp.lt.s32.totalorder %s2550_s20, %s2840_s1  ;;  %p2248_p10 = scmp.lt.s32.totalorder %s2246_s14, %s2241_s22 }
  0x40   : > { %p2244_p12 = pnand %p2242_p11, %p2215_p3 }
  0x41   : > { %p2249_p2 = por %p2248_p10, %p2247_p8 }
  0x42   : > { %p2245_p1 = pneg %p2244_p12 }
  0x44   : > { %p2250_p4 = pnand %p2249_p2, %p2245_p1 }
  0x46   : > { %2253 = shalt.err (!%p2250_p4)
}
  0x47   : > { %s2254_s18 = scalar_lea.vmem %s447_s23, 128  ;;  %s2340_s27 = smov [#allocation5]  }
  0x48   : > { %p2255_p5 = scmp.ne.s32.totalorder %s447_s23, %s2254_s18  ;;  %s2259_s19 = sshll.u32 %s2340_s27, 4  ;;  %s2260_s19 = int_to_ptr.vmem [resolvable:$false] %s2259_s19 }
  0x49   : > { %s2261_s0 = scalar_lea.vmem %s2260_s19, 256  ;;  %p2262_p11 = scmp.lt.s32.totalorder %s447_s23, %s2260_s19 }
  0x4a   : > { %p2257_p9 = pnand %p2255_p5, %p2215_p3  ;;  %p2263_p12 = scmp.lt.s32.totalorder %s2261_s0, %s2254_s18 }
  0x4c   : > { %p2258_p0 = pneg %p2257_p9  ;;  %p2264_p6 = por %p2263_p12, %p2262_p11 }
  0x4e   : > { %p2265_p7 = pnand %p2264_p6, %p2258_p0 }
  0x50   : > { %2268 = shalt.err (!%p2265_p7)
}
  0x51   : > { %2137 = dma.hbm_to_vmem [thread:$0]  (!%p2504_p13), %s2550_s20, 128, %s447_s23, %s436_s29  }
  0x52   : > { %p2883_p1 = scmp.ne.s32.totalorder %s2880_s26, 0 }
  0x53   : > { %s2576_s22 = sand.u32 (!%p2883_p1), 1, %s2329_s30   ;;  %p2884_p6 = scmp.ne.s32.totalorder (!%p2883_p1), %s2872_s24, 0 }
  0x54   : > { %455 = sbr.rel (%p2883_p1) target bundleno = 3582 (0xdfe), region = 76  ;;  %s2579_s21 = sshll.u32 (!%p2883_p1), %s2576_s22, 3 }
  0x55   : > { %s458_s14 = scalar_lea.sflag (!%p2883_p1), [#allocation3], %s2576_s22  ;;  %s461_s11 = scalar_lea.vmem (!%p2883_p1), [#allocation2], %s2579_s21 }
  0x59   : > { %2312 = dma.done.wait (%p2884_p6), %s458_s14, 128  }
  0x5a   : > { %2314 = vsyncadd (%p2884_p6), %s458_s14, 4294967168  ;;  %s467_s15 = scalar_lea.sflag [#allocation6], %s2576_s22  ;;  %s470_s26 = scalar_lea.vmem [#allocation5], %s2579_s21 }
  0x5b   : > { %2316 = dma.done.wait (%p2884_p6), %s467_s15, 128  }
  0x5c   : > { %2318 = vsyncadd (%p2884_p6), %s467_s15, 4294967168  ;;  %vm525_vm0 = vcmask 261120   ;;  %v2593_v0 = vld [vmem:[%s461_s11] sm:$0xff]  ;;  %v564_v7 = vld [vmem:[%s2841_s2 + $0x18] sm:$0xff]  ;;  %v2341_v8 = vmov 0.0   ;;  %vm2342_vm1 = vmmov 0  }
  0x5d   : > { %v526_v1 = vsel %vm525_vm0, %v2593_v0, 0.0  ;;  %2024 = vmatprep.subr.mxu0 %v2341_v8  ;;  %v563_v9 = vld [vmem:[%s2841_s2 + $0x10] sm:$0xff]  ;;  %2032 = vmatprep.mubr.msk.f32.mxu0 %vm2342_vm1, %v2341_v8  ;;  %v562_v10 = vld [vmem:[%s2841_s2 + $0x8] sm:$0xff]  ;;  %v561_v11 = vld [vmem:[%s2841_s2] sm:$0xff]  ;;  %s2343_s24 = smov 120   ;;  %s2344_s29 = smov 96  }
  0x5e   : > { %527 = vadd.xlane.f32.xlu0 %v526_v1  ;;  %2025 = vmatpush3.msra.mxu0 %v564_v7  ;;  %v1950_v20 = vld [vmem:[%s2845_s6] ss:$0 sm:$0xff]  ;;  %s2345_s28 = smov 88   ;;  %vm652_vm4 = vcmask 64512   ;;  %v2651_v33 = vld [vmem:[%s470_s26] sm:$0xff]  ;;  %s2346_s26 = smov 56  }
  0x5f   : > { %2040 = vmatprep.subr.mxu1 %v2341_v8  ;;  %2026 = vmatprep.subr.mxu0 %v2341_v8  ;;  %v1951_v23 = vld [vmem:[%s2846_s7] ss:$0 sm:$0xff]  ;;  %vm522_vm5 = vcmp.eq.f32.partialorder %v2651_v33, 0.0  ;;  %s2347_s18 = smov 64   ;;  %s2348_s27 = smov 80   ;;  %v646_v63 = vld [vmem:[%s2843_s4 + $0x8] sm:$0xff] }
  0x60   : > { %2042 = vmatprep.mubr.msk.f32.mxu1 %vm2342_vm1, %v2341_v8  ;;  %2027 = vmatpush3.msra.mxu0 %v563_v9  ;;  %v1952_v26 = vld [vmem:[%s2842_s3] ss:$0 sm:$0xff]  ;;  %s2349_s19 = smov 112   ;;  %s2350_s20 = smov 48   ;;  %vm1756_vm8 = vcmask 523264  }
  0x61   : > { %2028 = vmatprep.subr.mxu0 %v2341_v8  ;;  %v645_v62 = vld [vmem:[%s2843_s4] sm:$0xff]  ;;  %s2351_s23 = smov 104   ;;  %s2886_s0 = sld [smem:[#allocation18_spill]] }
  0x62   : > { %2029 = vmatpush3.msra.mxu0 %v562_v10  ;;  %s1833_s11 = scalar_lea.sflag [#allocation4], %s2576_s22  ;;  %p2887_p3 = scmp.ne.s32.totalorder %s2873_s25, 0 }
  0x63   : > { %2030 = vmatprep.subr.mxu0 %v2341_v8 }
  0x64   : > { %2031 = vmatpush3.msra.mxu0 %v561_v11 }
  0x65   : > { %2035 = vmatprep.subr.mxu0 %v2341_v8 }
  0xe7   : > { %v528_v2 = vpop.xlane.xlu0 %527 }
  0xe8   : > { %v530_v3 = vmul.f32 0.03125, %v528_v2 }
  0xea   : > { %v531_v4 = vsub.f32 %v2593_v0, %v530_v3 }
  0xec   : > { %v532_v5 = vmul.f32 %v531_v4, %v531_v4  ;;  %v543_v21 = vmul.f32 %v1950_v20, %v531_v4 }
  0xee   : > { %v533_v6 = vsel %vm525_vm0, %v532_v5, 0.0 }
  0xef   : > { %534 = vadd.xlane.f32.xlu0 %v533_v6 }
 0x178   : > { %v535_v12 = vpop.xlane.xlu0 %534 }
 0x179   : > { %v536_v13 = vmul.f32 0.032258064, %v535_v12 }
 0x17b   : > { %2189 = vrsqrt.f32 %v536_v13  ;;  %vm546_vm2 = vcmp.eq.f32.partialorder %v536_v13, inf  ;;  %v549_v16 = vand.u32 2147483648, %v536_v13  ;;  %vm548_vm3 = vcmp.eq.f32.partialorder %v536_v13, 0.0 }
 0x188   : > { %v2190_v14 = vpop.eup %2189 }
 0x189   : > { %v545_v15 = vmul.f32 %v2190_v14, %v536_v13 }
 0x18b   : > { %v547_v17 = vsel %vm546_vm2, %v536_v13, %v545_v15 }
 0x18c   : > { %v550_v18 = vsel %vm548_vm3, %v549_v16, %v547_v17 }
 0x18d   : > { %v551_v19 = vadd.f32 1e-06, %v550_v18 }
 0x18f   : > { %2191 = vrcp.f32 %v551_v19 }
 0x19c   : > { %v2192_v22 = vpop.eup %2191 }
 0x19d   : > { %v553_v24 = vmul.f32 %v2192_v22, %v543_v21 }
 0x19f   : > { %v560_v25 = vadd.f32 %v1951_v23, %v553_v24 }
 0x1a1   : > { %2033 = vmatmul.mubr.msk.f32.vlgmr.msra.gmra.mxu0 %vm525_vm0, %v560_v25 }
 0x1a2   : > { %2037 = vmatprep.mubr.msk.f32.mxu0 %vm2342_vm1, %v2341_v8 }
 0x261   : > { %v641_v27 = vpop.f32.mrf.mxu0 }
 0x262   : > { %v2633_v28 = vadd.f32 %v1952_v26, %v641_v27 }
 0x263   : > { %v2034_v29 = vpop.f32.mrf.mxu0 }
 0x264   : > { %816 = vrot.lane.b32.xlu0 %v2633_v28, %s2343_s24  ;;  %650 = vrot.lane.b32.xlu1 %v2633_v28, %s2344_s29  ;;  %s2352_s24 = smov 72   ;;  %s2885_s29 = sld [smem:[#allocation17_spill]] }
 0x268   : > { %818 = vrot.lane.b32.xlu1 %v2633_v28, %s2345_s28  ;;  %s1978_s28 = sshll.u32 %s2451_s17, 7  ;;  %s2354_s17 = smov [#allocation7]  }
 0x269   : > { %s1844_s14 = scalar_lea.hbm %s2886_s0, %s1978_s28 }
 0x2d6   : > { %v651_v30 = vpop.permute.xlu1 %650  ;;  %v817_v32 = vpop.permute.xlu0 %816 }
 0x2d7   : > { %2036 = vmatpush3.xpose.msk.msra.mxu0 %vm652_vm4, %v651_v30  ;;  %v647_v30 = vld [vmem:[%s2843_s4 + $0x10] sm:$0xff] }
 0x2d8   : > { %2045 = vmatprep.subr.mxu0 %v2341_v8 }
 0x2da   : > { %2038 = vmatmul.mubr.msk.f32.vlgmr.msra.gmra.mxu0 %vm652_vm4, %v2633_v28  ;;  %v819_v31 = vpop.permute.xlu1 %818 }
 0x2db   : > { %2046 = vmatpush3.xpose.msk.msra.mxu0 %vm652_vm4, %v819_v31  ;;  %2047 = vmatprep.mubr.msk.f32.mxu0 %vm2342_vm1, %v2341_v8 }
 0x2dc   : > { %2055 = vmatprep.subr.mxu0 %v2341_v8 }
 0x2de   : > { %2048 = vmatmul.mubr.msk.f32.vlgmr.msra.gmra.mxu0 %vm652_vm4, %v817_v32 }
 0x2df   : > { %2057 = vmatprep.mubr.msk.f32.mxu0 %vm2342_vm1, %v2341_v8  ;;  %2056 = vmatpush3.msra.mxu0 %v646_v63 }
 0x2e0   : > { %2065 = vmatprep.subr.mxu0 %v2341_v8 }
 0x39a   : > { %v723_v34 = vpop.f32.mrf.mxu0 }
 0x39b   : > { %v727_v35 = vmul.f32 0.35355338, %v723_v34 }
 0x39c   : > { %v2039_v36 = vpop.f32.mrf.mxu0 }
 0x39d   : > { %v728_v37 = vsel %vm522_vm5, -1e+09, %v727_v35 }
 0x39e   : > { %v890_v38 = vpop.f32.mrf.mxu0  ;;  %v729_v39 = vsel %vm652_vm4, %v728_v37, -inf }
 0x39f   : > { %v894_v40 = vmul.f32 0.35355338, %v890_v38  ;;  %730 = vmax.xlane.f32.xlu1 %v729_v39 }
 0x3a0   : > { %v2049_v41 = vpop.f32.mrf.mxu0 }
 0x3a1   : > { %v895_v42 = vsel %vm522_vm5, -1e+09, %v894_v40 }
 0x3a2   : > { %v896_v43 = vsel %vm652_vm4, %v895_v42, -inf }
 0x3a3   : > { %897 = vmax.xlane.f32.xlu0 %v896_v43 }
 0x3b9   : > { %907 = vrot.lane.b32.xlu0 %v2633_v28, %s2346_s26  ;;  %s2353_s26 = smov 40  }
 0x428   : > { %v731_v44 = vpop.xlane.xlu1 %730 }
 0x429   : > { %v732_v45 = vsub.f32 %v728_v37, %v731_v44  ;;  %v648_v44 = vld [vmem:[%s2843_s4 + $0x18] sm:$0xff] }
 0x42b   : > { %v733_v46 = vmul.f32 1.442695, %v732_v45 }
 0x42c   : > { %v898_v47 = vpop.xlane.xlu0 %897 }
 0x42d   : > { %2193 = vpow2.f32 %v733_v46  ;;  %v899_v48 = vsub.f32 %v895_v42, %v898_v47 }
 0x42f   : > { %v900_v49 = vmul.f32 1.442695, %v899_v48 }
 0x430   : > { %v908_v59 = vpop.permute.xlu0 %907 }
 0x431   : > { %2195 = vpow2.f32 %v900_v49 }
 0x43a   : > { %v2194_v50 = vpop.eup %2193 }
 0x43b   : > { %v735_v51 = vsel %vm652_vm4, %v2194_v50, 0.0 }
 0x43c   : > { %736 = vadd.xlane.f32.xlu1 %v735_v51 }
 0x43e   : > { %v2196_v52 = vpop.eup %2195 }
 0x43f   : > { %v902_v53 = vsel %vm652_vm4, %v2196_v52, 0.0 }
 0x440   : > { %903 = vadd.xlane.f32.xlu1 %v902_v53 }
 0x451   : > { %740 = vrot.lane.b32.xlu1 %v2633_v28, %s2347_s18 }
 0x455   : > { %1131 = vrot.lane.b32.xlu1 %v2633_v28, %s2348_s27 }
 0x459   : > { %1129 = vrot.lane.b32.xlu1 %v2633_v28, %s2349_s19 }
 0x4c5   : > { %v737_v54 = vpop.xlane.xlu1 %736 }
 0x4c6   : > { %2197 = vrcp.f32 %v737_v54  ;;  %v1970_v54 = vld [vmem:[%s2844_s5] ss:$0 sm:$0xff] }
 0x4c9   : > { %v904_v55 = vpop.xlane.xlu1 %903 }
 0x4ca   : > { %2199 = vrcp.f32 %v904_v55 }
 0x4cd   : > { %v741_v56 = vpop.permute.xlu1 %740 }
 0x4ce   : > { %2041 = vmatpush3.msra.mxu1 %v741_v56 }
 0x4cf   : > { %2050 = vmatprep.subr.mxu1 %v2341_v8 }
 0x4d1   : > { %v1132_v2 = vpop.permute.xlu1 %1131 }
 0x4d3   : > { %v2198_v57 = vpop.eup %2197 }
 0x4d4   : > { %v739_v58 = vmul.f32 %v2198_v57, %v2194_v50 }
 0x4d5   : > { %v1130_v6 = vpop.permute.xlu1 %1129 }
 0x4d6   : > { %2043 = vmatmul.mubr.msk.f32.vlgmr.msra.gmra.mxu1 %vm652_vm4, %v739_v58 }
 0x4d7   : > { %v2200_v60 = vpop.eup %2199  ;;  %2051 = vmatpush3.msra.mxu1 %v908_v59  ;;  %2052 = vmatprep.mubr.msk.f32.mxu1 %vm2342_vm1, %v2341_v8 }
 0x4d8   : > { %v906_v61 = vmul.f32 %v2200_v60, %v2196_v52  ;;  %2060 = vmatprep.subr.mxu1 %v2341_v8 }
 0x4da   : > { %2053 = vmatmul.mubr.msk.f32.vlgmr.msra.gmra.mxu1 %vm652_vm4, %v906_v61 }
 0x4db   : > { %2062 = vmatprep.mubr.msk.f32.mxu1 %vm2342_vm1, %v2341_v8  ;;  %2061 = vmatpush3.msra.mxu1 %v645_v62 }
 0x4dc   : > { %2070 = vmatprep.subr.mxu1 %v2341_v8 }
 0x596   : > { %v812_v1 = vpop.f32.mrf.mxu1 }
 0x597   : > { %2063 = vmatmul.mubr.msk.f32.vlgmr.msra.gmra.mxu1 %vm652_vm4, %v812_v1  ;;  %v1659_v1 = vld [vmem:[%s2847_s8 + $0x18] sm:$0xff] }
 0x598   : > { %v2044_v3 = vpop.f32.mrf.mxu1  ;;  %2072 = vmatprep.mubr.msk.f32.mxu1 %vm2342_vm1, %v2341_v8 }
 0x599   : > { %v1656_v3 = vld [vmem:[%s2847_s8] sm:$0xff] }
 0x59a   : > { %v979_v4 = vpop.f32.mrf.mxu1 }
 0x59b   : > { %2058 = vmatmul.mubr.msk.f32.vlgmr.msra.gmra.mxu0 %vm652_vm4, %v979_v4  ;;  %v1748_v4 = vld [vmem:[%s2849_s10 + $0x38] sm:$0xff] }
 0x59c   : > { %2066 = vmatpush3.xpose.msk.msra.mxu0 %vm652_vm4, %v1132_v2  ;;  %v2054_v5 = vpop.f32.mrf.mxu1  ;;  %2067 = vmatprep.mubr.msk.f32.mxu0 %vm2342_vm1, %v2341_v8  ;;  %v1657_v2 = vld [vmem:[%s2847_s8 + $0x8] sm:$0xff] }
 0x59d   : > { %2075 = vmatprep.subr.mxu0 %v2341_v8  ;;  %v1747_v5 = vld [vmem:[%s2849_s10 + $0x30] sm:$0xff] }
 0x59f   : > { %2068 = vmatmul.mubr.msk.f32.vlgmr.msra.gmra.mxu0 %vm652_vm4, %v1130_v6  ;;  %v1746_v6 = vld [vmem:[%s2849_s10 + $0x28] sm:$0xff] }
 0x5a0   : > { %2077 = vmatprep.mubr.msk.f32.mxu0 %vm2342_vm1, %v2341_v8  ;;  %2076 = vmatpush3.msra.mxu0 %v647_v30 }
 0x5a1   : > { %2085 = vmatprep.subr.mxu0 %v2341_v8 }
 0x657   : > { %v1125_v7 = vpop.f32.mrf.mxu1 }
 0x659   : > { %v2064_v9 = vpop.f32.mrf.mxu1 }
 0x65a   : > { %v1744_v9 = vld [vmem:[%s2849_s10 + $0x18] sm:$0xff] }
 0x65b   : > { %v1052_v10 = vpop.f32.mrf.mxu0 }
 0x65c   : > { %v1126_v11 = vadd.f32 %v1125_v7, %v1052_v10  ;;  %v1745_v7 = vld [vmem:[%s2849_s10 + $0x20] sm:$0xff] }
 0x65d   : > { %v2059_v12 = vpop.f32.mrf.mxu0 }
 0x65f   : > { %v1203_v13 = vpop.f32.mrf.mxu0 }
 0x660   : > { %v1207_v14 = vmul.f32 0.35355338, %v1203_v13 }
 0x661   : > { %v2069_v15 = vpop.f32.mrf.mxu0 }
 0x662   : > { %v1208_v16 = vsel %vm522_vm5, -1e+09, %v1207_v14 }
 0x663   : > { %v1209_v17 = vsel %vm652_vm4, %v1208_v16, -inf }
 0x664   : > { %1210 = vmax.xlane.f32.xlu1 %v1209_v17 }
 0x675   : > { %1220 = vrot.lane.b32.xlu1 %v2633_v28, %s2350_s20 }
 0x679   : > { %1370 = vrot.lane.b32.xlu1 %v2633_v28, %s2351_s23 }
 0x6ed   : > { %v1211_v18 = vpop.xlane.xlu1 %1210 }
 0x6ee   : > { %v1212_v19 = vsub.f32 %v1208_v16, %v1211_v18  ;;  %v1971_v18 = vld [vmem:[%s2851_s12] ss:$0 sm:$0xff] }
 0x6f0   : > { %v1213_v20 = vmul.f32 1.442695, %v1212_v19 }
 0x6f1   : > { %v1221_v21 = vpop.permute.xlu1 %1220 }
 0x6f2   : > { %2201 = vpow2.f32 %v1213_v20  ;;  %2071 = vmatpush3.msra.mxu1 %v1221_v21  ;;  %v1972_v21 = vld [vmem:[%s2852_s13] ss:$0 sm:$0xff] }
 0x6f3   : > { %2080 = vmatprep.subr.mxu1 %v2341_v8 }
 0x6f5   : > { %v1371_v29 = vpop.permute.xlu1 %1370 }
 0x6ff   : > { %v2202_v22 = vpop.eup %2201 }
 0x700   : > { %v1215_v23 = vsel %vm652_vm4, %v2202_v22, 0.0 }
 0x701   : > { %1216 = vadd.xlane.f32.xlu0 %v1215_v23 }
 0x717   : > { %1372 = vrot.lane.b32.xlu0 %v2633_v28, %s2352_s24 }
 0x78a   : > { %v1217_v24 = vpop.xlane.xlu0 %1216 }
 0x78b   : > { %2203 = vrcp.f32 %v1217_v24  ;;  %v1743_v24 = vld [vmem:[%s2849_s10 + $0x10] sm:$0xff] }
 0x78e   : > { %v1373_v27 = vpop.permute.xlu0 %1372 }
 0x798   : > { %v2204_v25 = vpop.eup %2203 }
 0x799   : > { %v1219_v26 = vmul.f32 %v2204_v25, %v2202_v22  ;;  %v1742_v25 = vld [vmem:[%s2849_s10 + $0x8] sm:$0xff] }
 0x79b   : > { %2073 = vmatmul.mubr.msk.f32.vlgmr.msra.gmra.mxu1 %vm652_vm4, %v1219_v26  ;;  %v1741_v26 = vld [vmem:[%s2849_s10] sm:$0xff] }
 0x79c   : > { %2081 = vmatpush3.xpose.msk.msra.mxu1 %vm652_vm4, %v1373_v27  ;;  %2082 = vmatprep.mubr.msk.f32.mxu1 %vm2342_vm1, %v2341_v8  ;;  %v1973_v27 = vld [vmem:[%s2848_s9] ss:$0 sm:$0xff] }
 0x79d   : > { %2090 = vmatprep.subr.mxu1 %v2341_v8 }
 0x79f   : > { %2083 = vmatmul.mubr.msk.f32.vlgmr.msra.gmra.mxu1 %vm652_vm4, %v1371_v29 }
 0x7a0   : > { %2092 = vmatprep.mubr.msk.f32.mxu1 %vm2342_vm1, %v2341_v8  ;;  %2091 = vmatpush3.msra.mxu1 %v648_v44 }
 0x7a1   : > { %2106 = vmatprep.subr.mxu1 %v2341_v8 }
 0x85b   : > { %v1292_v31 = vpop.f32.mrf.mxu1 }
 0x85c   : > { %2078 = vmatmul.mubr.msk.f32.vlgmr.msra.gmra.mxu0 %vm652_vm4, %v1292_v31 }
 0x85d   : > { %v2074_v32 = vpop.f32.mrf.mxu1  ;;  %2087 = vmatprep.mubr.msk.f32.mxu0 %vm2342_vm1, %v2341_v8 }
 0x85f   : > { %v1444_v34 = vpop.f32.mrf.mxu1 }
 0x860   : > { %v1448_v35 = vmul.f32 0.35355338, %v1444_v34  ;;  %v1975_v34 = vld [vmem:[%s2885_s29] ss:$0 sm:$0xff] }
 0x861   : > { %v2084_v36 = vpop.f32.mrf.mxu1 }
 0x862   : > { %v1449_v37 = vsel %vm522_vm5, -1e+09, %v1448_v35 }
 0x863   : > { %v1450_v38 = vsel %vm652_vm4, %v1449_v37, -inf }
 0x864   : > { %1451 = vmax.xlane.f32.xlu1 %v1450_v38 }
 0x8ed   : > { %v1452_v39 = vpop.xlane.xlu1 %1451 }
 0x8ee   : > { %v1453_v40 = vsub.f32 %v1449_v37, %v1452_v39 }
 0x8f0   : > { %v1454_v41 = vmul.f32 1.442695, %v1453_v40 }
 0x8f2   : > { %2205 = vpow2.f32 %v1454_v41 }
 0x8ff   : > { %v2206_v42 = vpop.eup %2205 }
 0x900   : > { %v1456_v43 = vsel %vm652_vm4, %v2206_v42, 0.0 }
 0x901   : > { %1457 = vadd.xlane.f32.xlu0 %v1456_v43 }
 0x917   : > { %1461 = vrot.lane.b32.xlu0 %v2633_v28, %s2353_s26  ;;  %s519_s26 = scalar_lea.vmem [#allocation7], %s2579_s21  ;;  %s2273_s21 = sshll.u32 %s2354_s17, 4  ;;  %s2274_s21 = int_to_ptr.vmem [resolvable:$false] %s2273_s21 }
 0x918   : > { %s1846_s18 = sshll.u32 %s519_s26, 4  ;;  %s2275_s20 = scalar_lea.vmem %s2274_s21, 256  ;;  %s1847_s18 = int_to_ptr.vmem [resolvable:$true] %s1846_s18 }
 0x919   : > { %s2269_s15 = scalar_lea.vmem %s1847_s18, 128  ;;  %p2276_p10 = scmp.lt.s32.totalorder %s1847_s18, %s2274_s21 }
 0x91a   : > { %p2270_p13 = scmp.ne.s32.totalorder %s1847_s18, %s2269_s15  ;;  %p2277_p2 = scmp.lt.s32.totalorder %s2275_s20, %s2269_s15 }
 0x91c   : > { %v1365_v33 = vpop.f32.mrf.mxu0  ;;  %p2271_p7 = pnand %p2270_p13, %p2887_p3  ;;  %p2278_p4 = por %p2277_p2, %p2276_p10 }
 0x91d   : > { %v1369_v45 = vadd.f32 %v1365_v33, %v1126_v11 }
 0x91e   : > { %v2079_v46 = vpop.f32.mrf.mxu0  ;;  %p2272_p8 = pneg %p2271_p7 }
 0x920   : > { %p2279_p5 = pnand %p2278_p4, %p2272_p8 }
 0x98a   : > { %v1458_v47 = vpop.xlane.xlu0 %1457 }
 0x98b   : > { %2207 = vrcp.f32 %v1458_v47 }
 0x98e   : > { %v1462_v48 = vpop.permute.xlu0 %1461 }
 0x98f   : > { %2086 = vmatpush3.msra.mxu0 %v1462_v48 }
 0x990   : > { %2095 = vmatprep.subr.mxu0 %v2341_v8 }
 0x998   : > { %v2208_v49 = vpop.eup %2207 }
 0x999   : > { %v1460_v50 = vmul.f32 %v2208_v49, %v2206_v42 }
 0x99b   : > { %2088 = vmatmul.mubr.msk.f32.vlgmr.msra.gmra.mxu0 %vm652_vm4, %v1460_v50 }
 0x99c   : > { %2103 = vmatprep.mubr.msk.f32.mxu0 %vm2342_vm1, %v2341_v8  ;;  %2096 = vmatpush3.msra.mxu0 %v1659_v1 }
 0x99d   : > { %2097 = vmatprep.subr.mxu0 %v2341_v8 }
 0xa5b   : > { %v1533_v28 = vpop.f32.mrf.mxu0 }
 0xa5c   : > { %2093 = vmatmul.mubr.msk.f32.vlgmr.msra.gmra.mxu1 %vm652_vm4, %v1533_v28 }
 0xa5d   : > { %v2089_v51 = vpop.f32.mrf.mxu0  ;;  %2122 = vmatprep.mubr.msk.f32.mxu1 %vm2342_vm1, %v2341_v8  ;;  %2107 = vmatpush3.msra.mxu1 %v1748_v4 }
 0xa5e   : > { %2108 = vmatprep.subr.mxu1 %v2341_v8 }
 0xa5f   : > { %2109 = vmatpush3.msra.mxu1 %v1747_v5 }
 0xa60   : > { %2110 = vmatprep.subr.mxu1 %v2341_v8 }
 0xa61   : > { %2111 = vmatpush3.msra.mxu1 %v1746_v6 }
 0xa62   : > { %2112 = vmatprep.subr.mxu1 %v2341_v8 }
 0xa63   : > { %2113 = vmatpush3.msra.mxu1 %v1745_v7 }
 0xa64   : > { %2114 = vmatprep.subr.mxu1 %v2341_v8 }
 0xa65   : > { %2115 = vmatpush3.msra.mxu1 %v1744_v9 }
 0xa66   : > { %2116 = vmatprep.subr.mxu1 %v2341_v8 }
 0xa67   : > { %2117 = vmatpush3.msra.mxu1 %v1743_v24 }
 0xa68   : > { %2118 = vmatprep.subr.mxu1 %v2341_v8 }
 0xa69   : > { %2119 = vmatpush3.msra.mxu1 %v1742_v25 }
 0xa6a   : > { %2120 = vmatprep.subr.mxu1 %v2341_v8 }
 0xa6b   : > { %2121 = vmatpush3.msra.mxu1 %v1741_v26 }
 0xb1c   : > { %v1606_v52 = vpop.f32.mrf.mxu1 }
 0xb1d   : > { %v1610_v53 = vadd.f32 %v1606_v52, %v1369_v45 }
 0xb1e   : > { %v2094_v55 = vpop.f32.mrf.mxu1 }
 0xb1f   : > { %v1611_v56 = vadd.f32 %v1610_v53, %v2593_v0  ;;  %v1658_v0 = vld [vmem:[%s2847_s8 + $0x10] sm:$0xff] }
 0xb20   : > { %2098 = vmatpush3.msra.mxu0 %v1658_v0 }
 0xb21   : > { %v2736_v57 = vadd.f32 %v1970_v54, %v1611_v56  ;;  %2099 = vmatprep.subr.mxu0 %v2341_v8 }
 0xb22   : > { %2100 = vmatpush3.msra.mxu0 %v1657_v2 }
 0xb23   : > { %v1622_v58 = vsel %vm525_vm0, %v2736_v57, 0.0  ;;  %2101 = vmatprep.subr.mxu0 %v2341_v8 }
 0xb24   : > { %1623 = vadd.xlane.f32.xlu1 %v1622_v58  ;;  %2102 = vmatpush3.msra.mxu0 %v1656_v3 }
 0xbad   : > { %v1624_v59 = vpop.xlane.xlu1 %1623 }
 0xbae   : > { %v1625_v60 = vmul.f32 0.03125, %v1624_v59 }
 0xbb0   : > { %v1626_v61 = vsub.f32 %v2736_v57, %v1625_v60 }
 0xbb2   : > { %v1627_v62 = vmul.f32 %v1626_v61, %v1626_v61  ;;  %v1638_v19 = vmul.f32 %v1971_v18, %v1626_v61 }
 0xbb4   : > { %v1628_v63 = vsel %vm525_vm0, %v1627_v62, 0.0 }
 0xbb5   : > { %1629 = vadd.xlane.f32.xlu1 %v1628_v63 }
 0xc3e   : > { %v1630_v10 = vpop.xlane.xlu1 %1629 }
 0xc3f   : > { %v1631_v11 = vmul.f32 0.032258064, %v1630_v10 }
 0xc41   : > { %2209 = vrsqrt.f32 %v1631_v11  ;;  %vm1641_vm6 = vcmp.eq.f32.partialorder %v1631_v11, inf  ;;  %v1644_v14 = vand.u32 2147483648, %v1631_v11  ;;  %vm1643_vm7 = vcmp.eq.f32.partialorder %v1631_v11, 0.0 }
 0xc4e   : > { %v2210_v12 = vpop.eup %2209 }
 0xc4f   : > { %v1640_v13 = vmul.f32 %v2210_v12, %v1631_v11 }
 0xc51   : > { %v1642_v15 = vsel %vm1641_vm6, %v1631_v11, %v1640_v13 }
 0xc52   : > { %v1645_v16 = vsel %vm1643_vm7, %v1644_v14, %v1642_v15 }
 0xc53   : > { %v1646_v17 = vadd.f32 1e-06, %v1645_v16 }
 0xc55   : > { %2211 = vrcp.f32 %v1646_v17 }
 0xc62   : > { %v2212_v20 = vpop.eup %2211 }
 0xc63   : > { %v1648_v22 = vmul.f32 %v2212_v20, %v1638_v19 }
 0xc65   : > { %v1655_v23 = vadd.f32 %v1972_v21, %v1648_v22 }
 0xc67   : > { %2104 = vmatmul.mubr.msk.f32.vlgmr.msra.gmra.mxu0 %vm525_vm0, %v1655_v23 }
 0xd27   : > { %v1736_v29 = vpop.f32.mrf.mxu0 }
 0xd28   : > { %v1737_v30 = vadd.f32 %v1973_v27, %v1736_v29 }
 0xd29   : > { %v2105_v31 = vpop.f32.mrf.mxu0 }
 0xd2a   : > { %v1740_v32 = vmax.f32 %v1737_v30, 0.0 }
 0xd2c   : > { %2123 = vmatmul.mubr.msk.f32.vlgmr.msra.gmra.mxu1 %vm1756_vm8, %v1740_v32 }
 0xdec   : > { %v1826_v35 = vpop.f32.mrf.mxu1 }
 0xded   : > { %v1827_v8 = vadd.f32 %v1975_v34, %v1826_v35 }
 0xdee   : > { %v2124_v36 = vpop.f32.mrf.mxu1 }
 0xdef   : > { %v1830_v37 = vadd.f32 %v1827_v8, %v2736_v57 }
 0xdf1   : > { %1831 = vst.msk [vmem:[%s519_s26] sm:$0xff] %vm525_vm0, %v1830_v37 }
 0xdf2   : > { %2282 = shalt.err (!%p2279_p5)
}
 0xdf3   : > { %s2283_s23 = scalar_lea.hbm %s1844_s14, 128  ;;  %s2287_s29 = scalar_lea.hbm %s2886_s0, 256 }
 0xdf4   : > { %p2284_p9 = scmp.ne.s32.totalorder %s1844_s14, %s2283_s23  ;;  %p2288_p12 = scmp.lt.s32.totalorder %s1844_s14, %s2886_s0 }
 0xdf5   : > { %p2289_p1 = scmp.lt.s32.totalorder %s2287_s29, %s2283_s23 }
 0xdf6   : > { %p2285_p0 = pnand %p2284_p9, %p2887_p3 }
 0xdf7   : > { %p2290_p6 = por %p2289_p1, %p2288_p12 }
 0xdf8   : > { %p2286_p11 = pneg %p2285_p0 }
 0xdfa   : > { %p2291_p13 = pnand %p2290_p6, %p2286_p11 }
 0xdfc   : > { %2294 = shalt.err (!%p2291_p13)
}
 0xdfd   : > { %2129 = dma.vmem_to_hbm [thread:$0]  (%p2887_p3), %s1847_s18, 128, %s1844_s14, %s1833_s11  }
 0xdfe PF: > { %s2888_s27 = sld [smem:[#allocation11_spill]]  ;;  %p2891_p8 = scmp.ge.s32.totalorder %s2337_s16, 2 }
 0xdff   : > { %s2889_s19 = sld [smem:[#allocation15_spill]] }
 0xe04   : > { %s1858_s15 = sand.u32 1, %s2888_s27  }
 0xe05   : > { %p2890_p7 = scmp.ne.s32.totalorder %s2889_s19, 0  ;;  %s1859_s17 = scalar_lea.sflag [#allocation4], %s1858_s15 }
 0xe07   : > { %p2139_p10 = pnand %p2891_p8, %p2890_p7 }
 0xe09   : > { %p2140_p2 = pneg %p2139_p10 }
 0xe0b   : > { %2320 = dma.done.wait (%p2140_p2), %s1859_s17, 128  }
 0xe0c   : > { %2322 = vsyncadd (%p2140_p2), %s1859_s17, 4294967168  ;;  %s2892_s16 = sld [smem:[#allocation13_spill]]  ;;  %s2895_s29 = smov %s2329_s30 }
 0xe0d   : > { %s2893_s21 = sld [smem:[#allocation12_spill]] }
 0xe0e   : > { %s2894_s15 = sld [smem:[#allocation14_spill]] }
 0xe12   : > { %p30_p4 = scmp.ge.s32.totalorder %s2892_s16, 4  }
 0xe13   : > { %s2896_s30 = smov %s2893_s21 }
 0xe14   :  { %32 = sbr.rel (!%p30_p4) target bundleno = 11 (0xb), region = 134 }
 0xe19   :  { %1864 = vsyncpa [#allocation3], 1 }
 0xe1a   :  { %1866 = vsyncpa [#allocation3 + $0x1], 1 }
 0xe1b   :  { %1867 = vsyncpa [#allocation6], 1 }
 0xe1c   :  { %1869 = vsyncpa [#allocation6 + $0x1], 1 }
 0xe1d   :  { %1870 = vsyncpa [#allocation4], 1 }
 0xe1e   :  { %1872 = vsyncpa [#allocation4 + $0x1], 1 }

</bundles_post_ra>
